<compile_context>
chip_gen: v7x
topology: tpu7x:2x2x1
jax: 0.10.0
libtpu: 0.0.40
codegen_flags: <defaults>
</compile_context>

<pallas_src>
import jax
import jax.numpy as jnp
from jax import lax
from jax.experimental import pallas as pl
from jax.experimental.pallas import tpu as pltpu


_NEG_INF = -1e30  # bias for padded logit columns -> exp underflows to exactly 0


def _round_up(n, m):
    return ((n + m - 1) // m) * m


def _largest_divisor(n, cap):
    cap = max(1, min(int(cap), n))
    for d in range(cap, 0, -1):
        if n % d == 0:
            return d
    return 1


def _vmem_limit(block_bytes):
    """Scoped-VMEM limit: generous estimate with slack, capped with headroom
    below physical VMEM (v7x: 64 MiB -> cap ~48 MiB; v5e/v6e: 128 MiB -> ~96)."""
    try:
        phys = int(pltpu.get_tpu_info().vmem_capacity_bytes)
    except Exception:
        phys = 64 << 20  # conservative (v7x-sized) fallback
    cap = (phys * 3) // 4
    need = int(block_bytes) + (4 << 20)
    return int(min(max(need, 32 << 20), cap))


# --------------------------------------------------------------------------
# Pass 1: x-projection, time-parallel.  xproj = x @ W1x (f32) + b1 (row-masked)
# --------------------------------------------------------------------------
def _xproj_kernel(x_ref, w1x_ref, b1_ref, xp_ref):
    x = x_ref[...].astype(jnp.float32)
    xp_ref[...] = (
        jnp.dot(x, w1x_ref[...], preferred_element_type=jnp.float32) + b1_ref[...]
    )


# --------------------------------------------------------------------------
# Pass 2: the recurrence, sequential over time-blocks. h_t = xproj_t + h @ W1h
# --------------------------------------------------------------------------
def _recurrence_kernel(h0_ref, xp_ref, w1h_ref, hid_ref, h_scratch):
    @pl.when(pl.program_id(0) == 0)
    def _():
        h_scratch[...] = h0_ref[...]

    w1h = w1h_ref[...]  # VMEM-resident, loaded once per grid step

    def step(j, h):
        h = xp_ref[j] + jnp.dot(h, w1h, preferred_element_type=jnp.float32)
        hid_ref[j] = h
        return h

    h_scratch[...] = lax.fori_loop(
        0, xp_ref.shape[0], step, h_scratch[...], unroll=True
    )


# --------------------------------------------------------------------------
# Pass 3: h2o + log-softmax, time-parallel over all T*Bp rows.
# --------------------------------------------------------------------------
def _h2o_logsoftmax_kernel(hid_ref, w2_ref, b2_ref, out_ref):
    logits = (
        jnp.dot(hid_ref[...], w2_ref[...], preferred_element_type=jnp.float32)
        + b2_ref[...]
    )
    m = jnp.max(logits, axis=-1, keepdims=True)
    shifted = logits - m
    lse = jnp.log(jnp.sum(jnp.exp(shifted), axis=-1, keepdims=True))
    out_ref[...] = (shifted - lse).astype(out_ref.dtype)


def rnn_forward_sequence(xs, h0, w_i2h, b_i2h, w_h2o, b_h2o):
    """Fused multi-timestep RNN forward.

    xs:     (T, B, input_size)
    h0:     (B, hidden_size)
    w_i2h:  (hidden_size, input_size + hidden_size)   (PyTorch Linear layout)
    b_i2h:  (hidden_size,)
    w_h2o:  (output_size, hidden_size)
    b_h2o:  (output_size,)

    Returns (per-step log-softmax outputs (T, B, output_size),
             final hidden (B, hidden_size)).
    Per-step semantics are identical to RNN.forward applied T times.
    """
    T, B, I = xs.shape
    H = w_i2h.shape[0]
    O = w_h2o.shape[0]
    dtype = xs.dtype
    f32 = jnp.float32
    itemsize = jnp.dtype(dtype).itemsize

    # Lane/sublane-aligned padded sizes.
    Bp = _round_up(max(B, 8), 8)
    Ip = _round_up(I, 128)
    Hp = _round_up(H, 128)
    Op = _round_up(O, 128)

    # Split the i2h weight into x- and h- blocks, transpose to (K, N), zero-pad.
    w1x_t = jnp.zeros((Ip, Hp), f32).at[:I, :H].set(w_i2h[:, :I].T.astype(f32))
    w1h_t = jnp.zeros((Hp, Hp), f32).at[:H, :H].set(w_i2h[:, I:].T.astype(f32))
    w2_t = jnp.zeros((Hp, Op), f32).at[:H, :O].set(w_h2o.T.astype(f32))
    # b1 is folded into the x-projection and zeroed on padded batch rows so the
    # padded rows of the hidden state stay exactly 0 for every timestep.
    b1_rows = jnp.zeros((Bp, Hp), f32).at[:B, :H].set(
        jnp.broadcast_to(b_i2h.astype(f32), (B, H)))
    # Padded logit columns get a huge negative bias so exp() == 0 there.
    b2 = jnp.full((1, Op), _NEG_INF, f32).at[0, :O].set(b_h2o.astype(f32))

    # Streamed inputs stay in the caller dtype; padded rows/cols are zero.
    xs_p = jnp.zeros((T, Bp, Ip), dtype).at[:, :B, :I].set(xs)
    xs2 = xs_p.reshape(T * Bp, Ip)
    h0_p = jnp.zeros((Bp, Hp), f32).at[:B, :H].set(h0.astype(f32))

    # Time-block sizes (must divide T).
    Tx = _largest_divisor(T, max(1, (4 << 20) // (Bp * (Ip * itemsize + Hp * 4))))
    Tb = _largest_divisor(T, min(8, max(1, (2 << 20) // (Bp * Hp * 8))))
    To = _largest_divisor(T, max(1, (4 << 20) // (Bp * (Hp * 4 + Op * itemsize))))

    # Bias tile matching the pass-1 row block (Tx timesteps of Bp rows each).
    b1_tiled = jnp.tile(b1_rows, (Tx, 1))

    # ---------------- Pass 1: time-parallel x-projection ----------------
    xproj2 = pl.pallas_call(
        _xproj_kernel,
        grid=(T // Tx,),
        in_specs=[
            pl.BlockSpec((Tx * Bp, Ip), lambda i: (i, 0)),   # x rows, streamed
            pl.BlockSpec((Ip, Hp), lambda i: (0, 0)),        # W1x (resident)
            pl.BlockSpec((Tx * Bp, Hp), lambda i: (0, 0)),   # masked b1 (resident)
        ],
        out_specs=pl.BlockSpec((Tx * Bp, Hp), lambda i: (i, 0)),
        out_shape=jax.ShapeDtypeStruct((T * Bp, Hp), f32),
        compiler_params=pltpu.CompilerParams(
            dimension_semantics=("parallel",),
            vmem_limit_bytes=_vmem_limit(
                4 * (Ip * Hp + Tx * Bp * Hp)
                + 2 * (itemsize * Tx * Bp * Ip + 4 * Tx * Bp * Hp)),
        ),
        cost_estimate=pl.CostEstimate(
            flops=2 * T * Bp * Ip * Hp,
            transcendentals=0,
            bytes_accessed=itemsize * T * Bp * Ip
            + 4 * (Ip * Hp + Tx * Bp * Hp + T * Bp * Hp)),
    )(xs2, w1x_t, b1_tiled)
    xproj = xproj2.reshape(T, Bp, Hp)

    # ---------------- Pass 2: sequential recurrence ----------------
    hid3 = pl.pallas_call(
        _recurrence_kernel,
        grid=(T // Tb,),
        in_specs=[
            pl.BlockSpec((Bp, Hp), lambda i: (0, 0)),        # h0 (resident)
            pl.BlockSpec((Tb, Bp, Hp), lambda i: (i, 0, 0)), # xproj block
            pl.BlockSpec((Hp, Hp), lambda i: (0, 0)),        # W1h (resident)
        ],
        out_specs=pl.BlockSpec((Tb, Bp, Hp), lambda i: (i, 0, 0)),
        out_shape=jax.ShapeDtypeStruct((T, Bp, Hp), f32),
        scratch_shapes=[pltpu.VMEM((Bp, Hp), f32)],          # hidden carried on-chip
        compiler_params=pltpu.CompilerParams(
            dimension_semantics=("arbitrary",),              # timesteps are sequential
            vmem_limit_bytes=_vmem_limit(
                4 * (Bp * Hp + Hp * Hp + Bp * Hp) + 2 * (8 * Tb * Bp * Hp)),
        ),
        cost_estimate=pl.CostEstimate(
            flops=2 * T * Bp * Hp * Hp,
            transcendentals=0,
            bytes_accessed=4 * (2 * T * Bp * Hp + Hp * Hp + Bp * Hp)),
    )(h0_p, xproj, w1h_t)

    # ---------------- Pass 3: time-parallel h2o + log-softmax ----------------
    out2 = pl.pallas_call(
        _h2o_logsoftmax_kernel,
        grid=(T // To,),
        in_specs=[
            pl.BlockSpec((To * Bp, Hp), lambda i: (i, 0)),   # hidden rows, streamed
            pl.BlockSpec((Hp, Op), lambda i: (0, 0)),        # W2 (resident)
            pl.BlockSpec((1, Op), lambda i: (0, 0)),         # b2 (resident)
        ],
        out_specs=pl.BlockSpec((To * Bp, Op), lambda i: (i, 0)),
        out_shape=jax.ShapeDtypeStruct((T * Bp, Op), dtype),
        compiler_params=pltpu.CompilerParams(
            dimension_semantics=("parallel",),
            vmem_limit_bytes=_vmem_limit(
                4 * (Hp * Op + Op)
                + 2 * (4 * To * Bp * Hp + itemsize * To * Bp * Op)),
        ),
        cost_estimate=pl.CostEstimate(
            flops=2 * T * Bp * Hp * Op,
            transcendentals=T * Bp * Op,
            bytes_accessed=4 * (T * Bp * Hp + Hp * Op)
            + itemsize * T * Bp * Op),
    )(hid3.reshape(T * Bp, Hp), w2_t, b2)

    outs = out2.reshape(T, Bp, Op)[:, :B, :O]
    h_final = hid3[T - 1, :B, :H].astype(dtype)
    return outs, h_final


def rnn_forward(x, hidden, w_i2h, b_i2h, w_h2o, b_h2o):
    """Single-step forward matching RNN.forward(input, hidden) exactly."""
    out_seq, new_hidden = rnn_forward_sequence(
        x[None], hidden, w_i2h, b_i2h, w_h2o, b_h2o)
    return out_seq[0], new_hidden


def _init_params(key, input_size, hidden_size, output_size):
    """Deterministic PyTorch-Linear-style init (uniform +/- 1/sqrt(fan_in))."""
    k1, k2, k3, k4 = jax.random.split(key, 4)
    fan1 = input_size + hidden_size
    bound1 = 1.0 / jnp.sqrt(fan1)
    w_i2h = jax.random.uniform(k1, (hidden_size, fan1), jnp.float32, -bound1, bound1)
    b_i2h = jax.random.uniform(k2, (hidden_size,), jnp.float32, -bound1, bound1)
    bound2 = 1.0 / jnp.sqrt(hidden_size)
    w_h2o = jax.random.uniform(k3, (output_size, hidden_size), jnp.float32, -bound2, bound2)
    b_h2o = jax.random.uniform(k4, (output_size,), jnp.float32, -bound2, bound2)
    return w_i2h, b_i2h, w_h2o, b_h2o


if __name__ == "__main__":
    input_size, hidden_size, output_size = 16, 32, 8
    batch, seq_len = 2, 8

    key = jax.random.PRNGKey(0)
    kx, kp = jax.random.split(key, 2)

    xs = jax.random.normal(kx, (seq_len, batch, input_size), jnp.float32)
    hidden0 = jnp.zeros((batch, hidden_size), jnp.float32)  # initHidden, broadcast to batch
    w_i2h, b_i2h, w_h2o, b_h2o = _init_params(kp, input_size, hidden_size, output_size)

    # Fused three-pass pipeline (parallel xproj -> serial recurrence -> parallel softmax).
    outs, h_final = jax.jit(rnn_forward_sequence)(xs, hidden0, w_i2h, b_i2h, w_h2o, b_h2o)
    jax.block_until_ready((outs, h_final))

    # Pure-JAX step-by-step reference (exactly the PyTorch forward).
    def ref_step(h, x):
        combined = jnp.concatenate((x, h), axis=1)
        h_new = combined @ w_i2h.T + b_i2h
        logits = h_new @ w_h2o.T + b_h2o
        return h_new, jax.nn.log_softmax(logits, axis=1)

    h_ref = hidden0
    ref_outs = []
    for t in range(seq_len):
        h_ref, o_t = ref_step(h_ref, xs[t])
        ref_outs.append(o_t)
    ref_outs = jnp.stack(ref_outs, axis=0)

    assert jnp.allclose(outs, ref_outs, atol=1e-5, rtol=1e-5)
    assert jnp.allclose(h_final, h_ref, atol=1e-5, rtol=1e-5)

    # Single-step call (the literal nn.Module.forward signature).
    out1, h1 = jax.jit(rnn_forward)(xs[0], hidden0, w_i2h, b_i2h, w_h2o, b_h2o)
    jax.block_until_ready((out1, h1))
    assert jnp.allclose(out1, ref_outs[0], atol=1e-5, rtol=1e-5)
    assert jnp.allclose(h1, xs[0] @ w_i2h[:, :input_size].T
                        + hidden0 @ w_i2h[:, input_size:].T + b_i2h,
                        atol=1e-5, rtol=1e-5)

    print("KERNEL_OK")
</pallas_src>

<mosaic_0001>
module attributes {stable_mosaic.version = 11 : i64} {
  func.func @_xproj_kernel(%arg0: i32, %arg1: memref<64x128xf32, #tpu.memory_space<vmem>>, %arg2: memref<128x128xf32, #tpu.memory_space<vmem>>, %arg3: memref<64x128xf32, #tpu.memory_space<vmem>>, %arg4: memref<64x128xf32, #tpu.memory_space<vmem>>) attributes {dimension_semantics = [#tpu.dimension_semantics<parallel>], iteration_bounds = array<i64: 1>, scalar_prefetch = 0 : i64, scratch_operands = 0 : i64, tpu.core_type = #tpu.core_type<tc>, window_params = [{transform_indices = @transform_0, window_bounds = array<i64: 64, 128>}, {pipeline_mode = #tpu.pipeline_mode<synchronous>, transform_indices = @transform_1, window_bounds = array<i64: 128, 128>}, {pipeline_mode = #tpu.pipeline_mode<synchronous>, transform_indices = @transform_2, window_bounds = array<i64: 64, 128>}, {transform_indices = @transform_3, window_bounds = array<i64: 64, 128>}]} {
    %c0 = arith.constant 0 : index
    %c0_0 = arith.constant 0 : index
    %0 = vector.load %arg1[%c0, %c0_0] : memref<64x128xf32, #tpu.memory_space<vmem>>, vector<64x128xf32>
    %c0_1 = arith.constant 0 : index
    %c0_2 = arith.constant 0 : index
    %1 = vector.load %arg2[%c0_1, %c0_2] : memref<128x128xf32, #tpu.memory_space<vmem>>, vector<128x128xf32>
    %cst = arith.constant dense<0.000000e+00> : vector<64x128xf32>
    %2 = tpu.matmul %0, %1, %cst {dimension_numbers = #tpu.dot_dimension_numbers<[1], [0], [0], [1], [0, 0, 1, 1], [], []>} : vector<64x128xf32>, vector<128x128xf32>, vector<64x128xf32> -> vector<64x128xf32>
    %c0_3 = arith.constant 0 : index
    %c0_4 = arith.constant 0 : index
    %3 = vector.load %arg3[%c0_3, %c0_4] : memref<64x128xf32, #tpu.memory_space<vmem>>, vector<64x128xf32>
    %4 = arith.addf %2, %3 : vector<64x128xf32>
    %c0_5 = arith.constant 0 : index
    %c0_6 = arith.constant 0 : index
    %5 = vector.load %arg4[%c0_5, %c0_6] : memref<64x128xf32, #tpu.memory_space<vmem>>, vector<64x128xf32>
    tpu.vector_store %arg4[%c0_5, %c0_6], %4 {strides = array<i32>} : memref<64x128xf32, #tpu.memory_space<vmem>>, vector<64x128xf32>,
    return
  }
  func.func @transform_0(%arg0: i32) -> (i32, i32) {
    %c0_i32 = arith.constant 0 : i32
    %c0_i32_0 = arith.constant 0 : i32
    return %arg0, %c0_i32 : i32, i32
  }
  func.func @transform_1(%arg0: i32) -> (i32, i32) {
    %c0_i32 = arith.constant 0 : i32
    %c0_i32_0 = arith.constant 0 : i32
    %c0_i32_1 = arith.constant 0 : i32
    return %c0_i32, %c0_i32_0 : i32, i32
  }
  func.func @transform_2(%arg0: i32) -> (i32, i32) {
    %c0_i32 = arith.constant 0 : i32
    %c0_i32_0 = arith.constant 0 : i32
    %c0_i32_1 = arith.constant 0 : i32
    return %c0_i32, %c0_i32_0 : i32, i32
  }
  func.func @transform_3(%arg0: i32) -> (i32, i32) {
    %c0_i32 = arith.constant 0 : i32
    %c0_i32_0 = arith.constant 0 : i32
    return %arg0, %c0_i32 : i32, i32
  }
}

module attributes {stable_mosaic.version = 11 : i64} {
  func.func @_recurrence_kernel(%arg0: i32, %arg1: memref<8x128xf32, #tpu.memory_space<vmem>>, %arg2: memref<8x8x128xf32, #tpu.memory_space<vmem>>, %arg3: memref<128x128xf32, #tpu.memory_space<vmem>>, %arg4: memref<8x8x128xf32, #tpu.memory_space<vmem>>, %arg5: memref<8x128xf32, #tpu.memory_space<vmem>>) attributes {dimension_semantics = [#tpu.dimension_semantics<arbitrary>], iteration_bounds = array<i64: 1>, scalar_prefetch = 0 : i64, scratch_operands = 1 : i64, tpu.core_type = #tpu.core_type<tc>, window_params = [{pipeline_mode = #tpu.pipeline_mode<synchronous>, transform_indices = @transform_0, window_bounds = array<i64: 8, 128>}, {transform_indices = @transform_1, window_bounds = array<i64: 8, 8, 128>}, {pipeline_mode = #tpu.pipeline_mode<synchronous>, transform_indices = @transform_2, window_bounds = array<i64: 128, 128>}, {transform_indices = @transform_3, window_bounds = array<i64: 8, 8, 128>}]} {
    %c0_i32 = arith.constant 0 : i32
    %0 = arith.cmpi eq, %arg0, %c0_i32 : i32
    %1 = arith.extui %0 : i1 to i32
    %c0_i32_0 = arith.constant 0 : i32
    %2 = arith.cmpi ne, %1, %c0_i32_0 : i32
    scf.if %2 {
      %c0_46 = arith.constant 0 : index
      %c0_47 = arith.constant 0 : index
      %78 = vector.load %arg1[%c0_46, %c0_47] : memref<8x128xf32, #tpu.memory_space<vmem>>, vector<8x128xf32>
      %c0_48 = arith.constant 0 : index
      %c0_49 = arith.constant 0 : index
      %79 = vector.load %arg5[%c0_48, %c0_49] : memref<8x128xf32, #tpu.memory_space<vmem>>, vector<8x128xf32>
      tpu.vector_store %arg5[%c0_48, %c0_49], %78 {strides = array<i32>} : memref<8x128xf32, #tpu.memory_space<vmem>>, vector<8x128xf32>,
    } else {
    }
    %c0 = arith.constant 0 : index
    %c0_1 = arith.constant 0 : index
    %3 = vector.load %arg3[%c0, %c0_1] : memref<128x128xf32, #tpu.memory_space<vmem>>, vector<128x128xf32>
    %c0_2 = arith.constant 0 : index
    %c0_3 = arith.constant 0 : index
    %4 = vector.load %arg5[%c0_2, %c0_3] : memref<8x128xf32, #tpu.memory_space<vmem>>, vector<8x128xf32>
    %c0_i32_4 = arith.constant 0 : i32
    %5 = arith.index_cast %c0_i32_4 : i32 to index
    %c0_5 = arith.constant 0 : index
    %c0_6 = arith.constant 0 : index
    %6 = vector.load %arg2[%5, %c0_5, %c0_6] : memref<8x8x128xf32, #tpu.memory_space<vmem>>, vector<1x8x128xf32>
    %7 = vector.shape_cast %6 : vector<1x8x128xf32> to vector<8x128xf32>
    %cst = arith.constant dense<0.000000e+00> : vector<8x128xf32>
    %8 = tpu.matmul %4, %3, %cst {dimension_numbers = #tpu.dot_dimension_numbers<[1], [0], [0], [1], [0, 0, 1, 1], [], []>} : vector<8x128xf32>, vector<128x128xf32>, vector<8x128xf32> -> vector<8x128xf32>
    %9 = arith.addf %7, %8 : vector<8x128xf32>
    %10 = arith.index_cast %c0_i32_4 : i32 to index
    %c0_7 = arith.constant 0 : index
    %c0_8 = arith.constant 0 : index
    %11 = vector.load %arg4[%10, %c0_7, %c0_8] : memref<8x8x128xf32, #tpu.memory_space<vmem>>, vector<1x8x128xf32>
    %12 = vector.shape_cast %11 : vector<1x8x128xf32> to vector<8x128xf32>
    %13 = vector.shape_cast %9 : vector<8x128xf32> to vector<1x8x128xf32>
    tpu.vector_store %arg4[%10, %c0_7, %c0_8], %13 {strides = array<i32>} : memref<8x8x128xf32, #tpu.memory_space<vmem>>, vector<1x8x128xf32>,
    %c1_i32 = arith.constant 1 : i32
    %14 = arith.index_cast %c1_i32 : i32 to index
    %c0_9 = arith.constant 0 : index
    %c0_10 = arith.constant 0 : index
    %15 = vector.load %arg2[%14, %c0_9, %c0_10] : memref<8x8x128xf32, #tpu.memory_space<vmem>>, vector<1x8x128xf32>
    %16 = vector.shape_cast %15 : vector<1x8x128xf32> to vector<8x128xf32>
    %cst_11 = arith.constant dense<0.000000e+00> : vector<8x128xf32>
    %17 = tpu.matmul %9, %3, %cst_11 {dimension_numbers = #tpu.dot_dimension_numbers<[1], [0], [0], [1], [0, 0, 1, 1], [], []>} : vector<8x128xf32>, vector<128x128xf32>, vector<8x128xf32> -> vector<8x128xf32>
    %18 = arith.addf %16, %17 : vector<8x128xf32>
    %19 = arith.index_cast %c1_i32 : i32 to index
    %c0_12 = arith.constant 0 : index
    %c0_13 = arith.constant 0 : index
    %20 = vector.load %arg4[%19, %c0_12, %c0_13] : memref<8x8x128xf32, #tpu.memory_space<vmem>>, vector<1x8x128xf32>
    %21 = vector.shape_cast %20 : vector<1x8x128xf32> to vector<8x128xf32>
    %22 = vector.shape_cast %18 : vector<8x128xf32> to vector<1x8x128xf32>
    tpu.vector_store %arg4[%19, %c0_12, %c0_13], %22 {strides = array<i32>} : memref<8x8x128xf32, #tpu.memory_space<vmem>>, vector<1x8x128xf32>,
    %c2_i32 = arith.constant 2 : i32
    %23 = arith.index_cast %c2_i32 : i32 to index
    %c0_14 = arith.constant 0 : index
    %c0_15 = arith.constant 0 : index
    %24 = vector.load %arg2[%23, %c0_14, %c0_15] : memref<8x8x128xf32, #tpu.memory_space<vmem>>, vector<1x8x128xf32>
    %25 = vector.shape_cast %24 : vector<1x8x128xf32> to vector<8x128xf32>
    %cst_16 = arith.constant dense<0.000000e+00> : vector<8x128xf32>
    %26 = tpu.matmul %18, %3, %cst_16 {dimension_numbers = #tpu.dot_dimension_numbers<[1], [0], [0], [1], [0, 0, 1, 1], [], []>} : vector<8x128xf32>, vector<128x128xf32>, vector<8x128xf32> -> vector<8x128xf32>
    %27 = arith.addf %25, %26 : vector<8x128xf32>
    %28 = arith.index_cast %c2_i32 : i32 to index
    %c0_17 = arith.constant 0 : index
    %c0_18 = arith.constant 0 : index
    %29 = vector.load %arg4[%28, %c0_17, %c0_18] : memref<8x8x128xf32, #tpu.memory_space<vmem>>, vector<1x8x128xf32>
    %30 = vector.shape_cast %29 : vector<1x8x128xf32> to vector<8x128xf32>
    %31 = vector.shape_cast %27 : vector<8x128xf32> to vector<1x8x128xf32>
    tpu.vector_store %arg4[%28, %c0_17, %c0_18], %31 {strides = array<i32>} : memref<8x8x128xf32, #tpu.memory_space<vmem>>, vector<1x8x128xf32>,
    %c3_i32 = arith.constant 3 : i32
    %32 = arith.index_cast %c3_i32 : i32 to index
    %c0_19 = arith.constant 0 : index
    %c0_20 = arith.constant 0 : index
    %33 = vector.load %arg2[%32, %c0_19, %c0_20] : memref<8x8x128xf32, #tpu.memory_space<vmem>>, vector<1x8x128xf32>
    %34 = vector.shape_cast %33 : vector<1x8x128xf32> to vector<8x128xf32>
    %cst_21 = arith.constant dense<0.000000e+00> : vector<8x128xf32>
    %35 = tpu.matmul %27, %3, %cst_21 {dimension_numbers = #tpu.dot_dimension_numbers<[1], [0], [0], [1], [0, 0, 1, 1], [], []>} : vector<8x128xf32>, vector<128x128xf32>, vector<8x128xf32> -> vector<8x128xf32>
    %36 = arith.addf %34, %35 : vector<8x128xf32>
    %37 = arith.index_cast %c3_i32 : i32 to index
    %c0_22 = arith.constant 0 : index
    %c0_23 = arith.constant 0 : index
    %38 = vector.load %arg4[%37, %c0_22, %c0_23] : memref<8x8x128xf32, #tpu.memory_space<vmem>>, vector<1x8x128xf32>
    %39 = vector.shape_cast %38 : vector<1x8x128xf32> to vector<8x128xf32>
    %40 = vector.shape_cast %36 : vector<8x128xf32> to vector<1x8x128xf32>
    tpu.vector_store %arg4[%37, %c0_22, %c0_23], %40 {strides = array<i32>} : memref<8x8x128xf32, #tpu.memory_space<vmem>>, vector<1x8x128xf32>,
    %c4_i32 = arith.constant 4 : i32
    %41 = arith.index_cast %c4_i32 : i32 to index
    %c0_24 = arith.constant 0 : index
    %c0_25 = arith.constant 0 : index
    %42 = vector.load %arg2[%41, %c0_24, %c0_25] : memref<8x8x128xf32, #tpu.memory_space<vmem>>, vector<1x8x128xf32>
    %43 = vector.shape_cast %42 : vector<1x8x128xf32> to vector<8x128xf32>
    %cst_26 = arith.constant dense<0.000000e+00> : vector<8x128xf32>
    %44 = tpu.matmul %36, %3, %cst_26 {dimension_numbers = #tpu.dot_dimension_numbers<[1], [0], [0], [1], [0, 0, 1, 1], [], []>} : vector<8x128xf32>, vector<128x128xf32>, vector<8x128xf32> -> vector<8x128xf32>
    %45 = arith.addf %43, %44 : vector<8x128xf32>
    %46 = arith.index_cast %c4_i32 : i32 to index
    %c0_27 = arith.constant 0 : index
    %c0_28 = arith.constant 0 : index
    %47 = vector.load %arg4[%46, %c0_27, %c0_28] : memref<8x8x128xf32, #tpu.memory_space<vmem>>, vector<1x8x128xf32>
    %48 = vector.shape_cast %47 : vector<1x8x128xf32> to vector<8x128xf32>
    %49 = vector.shape_cast %45 : vector<8x128xf32> to vector<1x8x128xf32>
    tpu.vector_store %arg4[%46, %c0_27, %c0_28], %49 {strides = array<i32>} : memref<8x8x128xf32, #tpu.memory_space<vmem>>, vector<1x8x128xf32>,
    %c5_i32 = arith.constant 5 : i32
    %50 = arith.index_cast %c5_i32 : i32 to index
    %c0_29 = arith.constant 0 : index
    %c0_30 = arith.constant 0 : index
    %51 = vector.load %arg2[%50, %c0_29, %c0_30] : memref<8x8x128xf32, #tpu.memory_space<vmem>>, vector<1x8x128xf32>
    %52 = vector.shape_cast %51 : vector<1x8x128xf32> to vector<8x128xf32>
    %cst_31 = arith.constant dense<0.000000e+00> : vector<8x128xf32>
    %53 = tpu.matmul %45, %3, %cst_31 {dimension_numbers = #tpu.dot_dimension_numbers<[1], [0], [0], [1], [0, 0, 1, 1], [], []>} : vector<8x128xf32>, vector<128x128xf32>, vector<8x128xf32> -> vector<8x128xf32>
    %54 = arith.addf %52, %53 : vector<8x128xf32>
    %55 = arith.index_cast %c5_i32 : i32 to index
    %c0_32 = arith.constant 0 : index
    %c0_33 = arith.constant 0 : index
    %56 = vector.load %arg4[%55, %c0_32, %c0_33] : memref<8x8x128xf32, #tpu.memory_space<vmem>>, vector<1x8x128xf32>
    %57 = vector.shape_cast %56 : vector<1x8x128xf32> to vector<8x128xf32>
    %58 = vector.shape_cast %54 : vector<8x128xf32> to vector<1x8x128xf32>
    tpu.vector_store %arg4[%55, %c0_32, %c0_33], %58 {strides = array<i32>} : memref<8x8x128xf32, #tpu.memory_space<vmem>>, vector<1x8x128xf32>,
    %c6_i32 = arith.constant 6 : i32
    %59 = arith.index_cast %c6_i32 : i32 to index
    %c0_34 = arith.constant 0 : index
    %c0_35 = arith.constant 0 : index
    %60 = vector.load %arg2[%59, %c0_34, %c0_35] : memref<8x8x128xf32, #tpu.memory_space<vmem>>, vector<1x8x128xf32>
    %61 = vector.shape_cast %60 : vector<1x8x128xf32> to vector<8x128xf32>
    %cst_36 = arith.constant dense<0.000000e+00> : vector<8x128xf32>
    %62 = tpu.matmul %54, %3, %cst_36 {dimension_numbers = #tpu.dot_dimension_numbers<[1], [0], [0], [1], [0, 0, 1, 1], [], []>} : vector<8x128xf32>, vector<128x128xf32>, vector<8x128xf32> -> vector<8x128xf32>
    %63 = arith.addf %61, %62 : vector<8x128xf32>
    %64 = arith.index_cast %c6_i32 : i32 to index
    %c0_37 = arith.constant 0 : index
    %c0_38 = arith.constant 0 : index
    %65 = vector.load %arg4[%64, %c0_37, %c0_38] : memref<8x8x128xf32, #tpu.memory_space<vmem>>, vector<1x8x128xf32>
    %66 = vector.shape_cast %65 : vector<1x8x128xf32> to vector<8x128xf32>
    %67 = vector.shape_cast %63 : vector<8x128xf32> to vector<1x8x128xf32>
    tpu.vector_store %arg4[%64, %c0_37, %c0_38], %67 {strides = array<i32>} : memref<8x8x128xf32, #tpu.memory_space<vmem>>, vector<1x8x128xf32>,
    %c7_i32 = arith.constant 7 : i32
    %68 = arith.index_cast %c7_i32 : i32 to index
    %c0_39 = arith.constant 0 : index
    %c0_40 = arith.constant 0 : index
    %69 = vector.load %arg2[%68, %c0_39, %c0_40] : memref<8x8x128xf32, #tpu.memory_space<vmem>>, vector<1x8x128xf32>
    %70 = vector.shape_cast %69 : vector<1x8x128xf32> to vector<8x128xf32>
    %cst_41 = arith.constant dense<0.000000e+00> : vector<8x128xf32>
    %71 = tpu.matmul %63, %3, %cst_41 {dimension_numbers = #tpu.dot_dimension_numbers<[1], [0], [0], [1], [0, 0, 1, 1], [], []>} : vector<8x128xf32>, vector<128x128xf32>, vector<8x128xf32> -> vector<8x128xf32>
    %72 = arith.addf %70, %71 : vector<8x128xf32>
    %73 = arith.index_cast %c7_i32 : i32 to index
    %c0_42 = arith.constant 0 : index
    %c0_43 = arith.constant 0 : index
    %74 = vector.load %arg4[%73, %c0_42, %c0_43] : memref<8x8x128xf32, #tpu.memory_space<vmem>>, vector<1x8x128xf32>
    %75 = vector.shape_cast %74 : vector<1x8x128xf32> to vector<8x128xf32>
    %76 = vector.shape_cast %72 : vector<8x128xf32> to vector<1x8x128xf32>
    tpu.vector_store %arg4[%73, %c0_42, %c0_43], %76 {strides = array<i32>} : memref<8x8x128xf32, #tpu.memory_space<vmem>>, vector<1x8x128xf32>,
    %c8_i32 = arith.constant 8 : i32
    %c0_44 = arith.constant 0 : index
    %c0_45 = arith.constant 0 : index
    %77 = vector.load %arg5[%c0_44, %c0_45] : memref<8x128xf32, #tpu.memory_space<vmem>>, vector<8x128xf32>
    tpu.vector_store %arg5[%c0_44, %c0_45], %72 {strides = array<i32>} : memref<8x128xf32, #tpu.memory_space<vmem>>, vector<8x128xf32>,
    return
  }
  func.func @transform_0(%arg0: i32) -> (i32, i32) {
    %c0_i32 = arith.constant 0 : i32
    %c0_i32_0 = arith.constant 0 : i32
    %c0_i32_1 = arith.constant 0 : i32
    return %c0_i32, %c0_i32_0 : i32, i32
  }
  func.func @transform_1(%arg0: i32) -> (i32, i32, i32) {
    %c0_i32 = arith.constant 0 : i32
    %c0_i32_0 = arith.constant 0 : i32
    %c0_i32_1 = arith.constant 0 : i32
    return %arg0, %c0_i32, %c0_i32_0 : i32, i32, i32
  }
  func.func @transform_2(%arg0: i32) -> (i32, i32) {
    %c0_i32 = arith.constant 0 : i32
    %c0_i32_0 = arith.constant 0 : i32
    %c0_i32_1 = arith.constant 0 : i32
    return %c0_i32, %c0_i32_0 : i32, i32
  }
  func.func @transform_3(%arg0: i32) -> (i32, i32, i32) {
    %c0_i32 = arith.constant 0 : i32
    %c0_i32_0 = arith.constant 0 : i32
    %c0_i32_1 = arith.constant 0 : i32
    return %arg0, %c0_i32, %c0_i32_0 : i32, i32, i32
  }
}

module attributes {stable_mosaic.version = 11 : i64} {
  func.func @_h2o_logsoftmax_kernel(%arg0: i32, %arg1: memref<64x128xf32, #tpu.memory_space<vmem>>, %arg2: memref<128x128xf32, #tpu.memory_space<vmem>>, %arg3: memref<1x128xf32, #tpu.memory_space<vmem>>, %arg4: memref<64x128xf32, #tpu.memory_space<vmem>>) attributes {dimension_semantics = [#tpu.dimension_semantics<parallel>], iteration_bounds = array<i64: 1>, scalar_prefetch = 0 : i64, scratch_operands = 0 : i64, tpu.core_type = #tpu.core_type<tc>, window_params = [{transform_indices = @transform_0, window_bounds = array<i64: 64, 128>}, {pipeline_mode = #tpu.pipeline_mode<synchronous>, transform_indices = @transform_1, window_bounds = array<i64: 128, 128>}, {pipeline_mode = #tpu.pipeline_mode<synchronous>, transform_indices = @transform_2, window_bounds = array<i64: 1, 128>}, {transform_indices = @transform_3, window_bounds = array<i64: 64, 128>}]} {
    %c0 = arith.constant 0 : index
    %c0_0 = arith.constant 0 : index
    %0 = vector.load %arg1[%c0, %c0_0] : memref<64x128xf32, #tpu.memory_space<vmem>>, vector<64x128xf32>
    %c0_1 = arith.constant 0 : index
    %c0_2 = arith.constant 0 : index
    %1 = vector.load %arg2[%c0_1, %c0_2] : memref<128x128xf32, #tpu.memory_space<vmem>>, vector<128x128xf32>
    %cst = arith.constant dense<0.000000e+00> : vector<64x128xf32>
    %2 = tpu.matmul %0, %1, %cst {dimension_numbers = #tpu.dot_dimension_numbers<[1], [0], [0], [1], [0, 0, 1, 1], [], []>} : vector<64x128xf32>, vector<128x128xf32>, vector<64x128xf32> -> vector<64x128xf32>
    %c0_3 = arith.constant 0 : index
    %c0_4 = arith.constant 0 : index
    %3 = vector.load %arg3[%c0_3, %c0_4] : memref<1x128xf32, #tpu.memory_space<vmem>>, vector<1x128xf32>
    %4 = vector.broadcast %3 : vector<1x128xf32> to vector<64x128xf32>
    %5 = arith.addf %2, %4 : vector<64x128xf32>
    %cst_5 = arith.constant dense<0xFF800000> : vector<64xf32>
    %6 = vector.multi_reduction <maximumf>, %5, %cst_5 [1] : vector<64x128xf32> to vector<64xf32>
    %7 = vector.shape_cast %6 : vector<64xf32> to vector<64x1xf32>
    %8 = vector.broadcast %7 : vector<64x1xf32> to vector<64x128xf32>
    %9 = arith.subf %5, %8 : vector<64x128xf32>
    %10 = math.exp %9 : vector<64x128xf32>
    %cst_6 = arith.constant dense<0.000000e+00> : vector<64xf32>
    %11 = vector.multi_reduction <add>, %10, %cst_6 [1] : vector<64x128xf32> to vector<64xf32>
    %12 = vector.shape_cast %11 : vector<64xf32> to vector<64x1xf32>
    %13 = math.log %12 : vector<64x1xf32>
    %14 = vector.broadcast %13 : vector<64x1xf32> to vector<64x128xf32>
    %15 = arith.subf %9, %14 : vector<64x128xf32>
    %c0_7 = arith.constant 0 : index
    %c0_8 = arith.constant 0 : index
    %16 = vector.load %arg4[%c0_7, %c0_8] : memref<64x128xf32, #tpu.memory_space<vmem>>, vector<64x128xf32>
    tpu.vector_store %arg4[%c0_7, %c0_8], %15 {strides = array<i32>} : memref<64x128xf32, #tpu.memory_space<vmem>>, vector<64x128xf32>,
    return
  }
  func.func @transform_0(%arg0: i32) -> (i32, i32) {
    %c0_i32 = arith.constant 0 : i32
    %c0_i32_0 = arith.constant 0 : i32
    return %arg0, %c0_i32 : i32, i32
  }
  func.func @transform_1(%arg0: i32) -> (i32, i32) {
    %c0_i32 = arith.constant 0 : i32
    %c0_i32_0 = arith.constant 0 : i32
    %c0_i32_1 = arith.constant 0 : i32
    return %c0_i32, %c0_i32_0 : i32, i32
  }
  func.func @transform_2(%arg0: i32) -> (i32, i32) {
    %c0_i32 = arith.constant 0 : i32
    %c0_i32_0 = arith.constant 0 : i32
    %c0_i32_1 = arith.constant 0 : i32
    return %c0_i32, %c0_i32_0 : i32, i32
  }
  func.func @transform_3(%arg0: i32) -> (i32, i32) {
    %c0_i32 = arith.constant 0 : i32
    %c0_i32_0 = arith.constant 0 : i32
    return %arg0, %c0_i32 : i32, i32
  }
}

</mosaic_0001>

<bundles_post_ra>
// kernel: rnn_forward_sequence.3
= control target key start
LH: loop header
LB: loop body
LE: loop exit
PB: predicated region body
PF: predicated region fallthrough
CT: control target
= control target key end

     0   :  { %s419_s1 = inlined_call_operand.vmem [shape: f32[128,128], index: 1, kind: input, shape index: {}]   ;;  %s420_s0 = inlined_call_operand.vmem [shape: f32[64,128], index: 0, kind: input, shape index: {}]   ;;  %s421_s2 = inlined_call_operand.vmem [shape: f32[64,128], index: 2, kind: input, shape index: {}]   ;;  %s422_s3 = inlined_call_operand.vmem [shape: f32[64,128], index: 3, kind: output, shape index: {}]  }
   0x1   :  { %v22_v0 = vld [vmem:[%s419_s1] sm:$0xff]  ;;  %v23_v1 = vld [vmem:[%s419_s1 + $0x8] sm:$0xff]  ;;  %v24_v2 = vld [vmem:[%s419_s1 + $0x10] sm:$0xff] }
   0x2   :  { %v231_v3 = vpack.c.bf16 %v23_v1, %v22_v0  ;;  %v25_v4 = vld [vmem:[%s419_s1 + $0x18] sm:$0xff]  ;;  %v26_v6 = vld [vmem:[%s419_s1 + $0x20] sm:$0xff]  ;;  %v27_v7 = vld [vmem:[%s419_s1 + $0x28] sm:$0xff] }
   0x3   :  { %v235_v5 = vpack.c.bf16 %v25_v4, %v24_v2  ;;  %v239_v8 = vpack.c.bf16 %v27_v7, %v26_v6  ;;  %v14_v9 = vld [vmem:[%s420_s0] sm:$0xff]  ;;  %v28_v11 = vld [vmem:[%s419_s1 + $0x30] sm:$0xff]  ;;  %v29_v12 = vld [vmem:[%s419_s1 + $0x38] sm:$0xff] }
   0x4   :  { %232 = vmatprep.subr.bf16.mxu0 %v231_v3  ;;  %263 = vmatprep.subr.bf16.mxu1 %v231_v3  ;;  %v18_v10 = vld [vmem:[%s420_s0 + $0x20] sm:$0xff]  ;;  %v243_v13 = vpack.c.bf16 %v29_v12, %v28_v11  ;;  %v31_v15 = vld [vmem:[%s419_s1 + $0x48] sm:$0xff]  ;;  %v32_v17 = vld [vmem:[%s419_s1 + $0x50] sm:$0xff] }
   0x5   :  { %234 = vmatpush3.bf16.msra.mxu0 %v231_v3  ;;  %271 = vmatpush3.bf16.msra.mxu1 %v231_v3  ;;  %v30_v14 = vld [vmem:[%s419_s1 + $0x40] sm:$0xff]  ;;  %v33_v18 = vld [vmem:[%s419_s1 + $0x58] sm:$0xff]  ;;  %v35_v21 = vld [vmem:[%s419_s1 + $0x68] sm:$0xff] }
   0x6   :  { %236 = vmatprep.subr.bf16.mxu0 %v235_v5  ;;  %264 = vmatprep.subr.bf16.mxu1 %v235_v5  ;;  %v247_v16 = vpack.c.bf16 %v31_v15, %v30_v14  ;;  %v251_v19 = vpack.c.bf16 %v33_v18, %v32_v17  ;;  %v34_v20 = vld [vmem:[%s419_s1 + $0x60] sm:$0xff]  ;;  %v36_v23 = vld [vmem:[%s419_s1 + $0x70] sm:$0xff]  ;;  %v37_v24 = vld [vmem:[%s419_s1 + $0x78] sm:$0xff] }
   0x7   :  { %219 = vmatprep.mubr.f32.mxu0 %v14_v9  ;;  %225 = vmatprep.mubr.f32.mxu1 %v18_v10  ;;  %v255_v22 = vpack.c.bf16 %v35_v21, %v34_v20  ;;  %v259_v25 = vpack.c.bf16 %v37_v24, %v36_v23  ;;  %v15_v26 = vld [vmem:[%s420_s0 + $0x8] sm:$0xff]  ;;  %v16_v28 = vld [vmem:[%s420_s0 + $0x10] sm:$0xff]  ;;  %v17_v30 = vld [vmem:[%s420_s0 + $0x18] sm:$0xff] }
   0x8   :  { %v19_v27 = vld [vmem:[%s420_s0 + $0x28] sm:$0xff]  ;;  %v20_v29 = vld [vmem:[%s420_s0 + $0x30] sm:$0xff]  ;;  %v21_v31 = vld [vmem:[%s420_s0 + $0x38] sm:$0xff] }
   0x9   :  { %238 = vmatpush3.bf16.msra.mxu0 %v235_v5  ;;  %272 = vmatpush3.bf16.msra.mxu1 %v235_v5  ;;  %v39_v32 = vld [vmem:[%s421_s2 + $0x8] sm:$0xff]  ;;  %v38_v34 = vld [vmem:[%s421_s2] sm:$0xff]  ;;  %v41_v44 = vld [vmem:[%s421_s2 + $0x18] sm:$0xff] }
   0xa   :  { %240 = vmatprep.subr.bf16.mxu0 %v239_v8  ;;  %265 = vmatprep.subr.bf16.mxu1 %v239_v8  ;;  %v43_v33 = vld [vmem:[%s421_s2 + $0x28] sm:$0xff]  ;;  %v42_v35 = vld [vmem:[%s421_s2 + $0x20] sm:$0xff]  ;;  %v45_v45 = vld [vmem:[%s421_s2 + $0x38] sm:$0xff] }
   0xb   :  { %v40_v46 = vld [vmem:[%s421_s2 + $0x10] sm:$0xff] }
   0xc   :  { %v44_v47 = vld [vmem:[%s421_s2 + $0x30] sm:$0xff] }
   0xd   :  { %242 = vmatpush3.bf16.msra.mxu0 %v239_v8  ;;  %273 = vmatpush3.bf16.msra.mxu1 %v239_v8 }
   0xe   :  { %244 = vmatprep.subr.bf16.mxu0 %v243_v13  ;;  %266 = vmatprep.subr.bf16.mxu1 %v243_v13 }
  0x11   :  { %246 = vmatpush3.bf16.msra.mxu0 %v243_v13  ;;  %274 = vmatpush3.bf16.msra.mxu1 %v243_v13 }
  0x12   :  { %248 = vmatprep.subr.bf16.mxu0 %v247_v16  ;;  %267 = vmatprep.subr.bf16.mxu1 %v247_v16 }
  0x15   :  { %250 = vmatpush3.bf16.msra.mxu0 %v247_v16  ;;  %275 = vmatpush3.bf16.msra.mxu1 %v247_v16 }
  0x16   :  { %252 = vmatprep.subr.bf16.mxu0 %v251_v19  ;;  %268 = vmatprep.subr.bf16.mxu1 %v251_v19 }
  0x19   :  { %254 = vmatpush3.bf16.msra.mxu0 %v251_v19  ;;  %276 = vmatpush3.bf16.msra.mxu1 %v251_v19 }
  0x1a   :  { %256 = vmatprep.subr.bf16.mxu0 %v255_v22  ;;  %269 = vmatprep.subr.bf16.mxu1 %v255_v22 }
  0x1d   :  { %258 = vmatpush3.bf16.msra.mxu0 %v255_v22  ;;  %277 = vmatpush3.bf16.msra.mxu1 %v255_v22 }
  0x1e   :  { %260 = vmatprep.subr.bf16.mxu0 %v259_v25  ;;  %270 = vmatprep.subr.bf16.mxu1 %v259_v25 }
  0x21   :  { %262 = vmatpush3.bf16.msra.mxu0 %v259_v25  ;;  %278 = vmatpush3.bf16.msra.mxu1 %v259_v25 }
  0x24   :  { %220 = vmatmul.mubr.f32.vlgmr.msra.gmra.mrb[0].mxu0 %v15_v26  ;;  %226 = vmatmul.mubr.f32.vlgmr.msra.gmra.mrb[0].mxu1 %v19_v27 }
  0x25   :  { %222 = vmatprep.mubr.f32.mxu0 %v16_v28  ;;  %228 = vmatprep.mubr.f32.mxu1 %v20_v29 }
  0x28   :  { %223 = vmatmul.mubr.f32.gmra.mrb[2].mxu0 %v17_v30  ;;  %229 = vmatmul.mubr.f32.gmra.mrb[2].mxu1 %v21_v31 }
  0xf7   :  { %v221_v36 = vpop.f32.mrb[0].mxu0  ;;  %v227_v37 = vpop.f32.mrb[0].mxu1 }
  0xf8   :  { %v118_v38 = vadd.f32 %v221_v36, %v39_v32  ;;  %v138_v39 = vadd.f32 %v227_v37, %v43_v33  ;;  %v112_v40 = vpop.f32.mrb[1].mxu0  ;;  %v132_v41 = vpop.f32.mrb[1].mxu1 }
  0xf9   :  { %v113_v42 = vadd.f32 %v112_v40, %v38_v34  ;;  %v133_v43 = vadd.f32 %v132_v41, %v42_v35 }
  0xfa   :  { %152 = vst [vmem:[%s422_s3 + $0x8] sm:$0xff] %v118_v38  ;;  %156 = vst [vmem:[%s422_s3 + $0x28] sm:$0xff] %v138_v39 }
  0xfb   :  { %151 = vst [vmem:[%s422_s3] sm:$0xff] %v113_v42  ;;  %155 = vst [vmem:[%s422_s3 + $0x20] sm:$0xff] %v133_v43  ;;  %v224_v48 = vpop.f32.mrb[2].mxu0  ;;  %v230_v49 = vpop.f32.mrb[2].mxu1 }
  0xfc   :  { %v128_v50 = vadd.f32 %v224_v48, %v41_v44  ;;  %v148_v51 = vadd.f32 %v230_v49, %v45_v45  ;;  %v122_v52 = vpop.f32.mrb[3].mxu0  ;;  %v142_v53 = vpop.f32.mrb[3].mxu1 }
  0xfd   :  { %v123_v54 = vadd.f32 %v122_v52, %v40_v46  ;;  %v143_v55 = vadd.f32 %v142_v53, %v44_v47 }
  0xfe   :  { %154 = vst [vmem:[%s422_s3 + $0x18] sm:$0xff] %v128_v50  ;;  %158 = vst [vmem:[%s422_s3 + $0x38] sm:$0xff] %v148_v51 }
  0xff   :  { %153 = vst [vmem:[%s422_s3 + $0x10] sm:$0xff] %v123_v54  ;;  %157 = vst [vmem:[%s422_s3 + $0x30] sm:$0xff] %v143_v55 }

// kernel: rnn_forward_sequence.5
= control target key start
LH: loop header
LB: loop body
LE: loop exit
PB: predicated region body
PF: predicated region fallthrough
CT: control target
= control target key end

     0   :  { %s542_s1 = inlined_call_operand.vmem [shape: f32[128,128], index: 1, kind: input, shape index: {}]   ;;  %s543_s0 = inlined_call_operand.vmem [shape: f32[64,128], index: 0, kind: input, shape index: {}]   ;;  %s544_s2 = inlined_call_operand.vmem [shape: f32[1,128], index: 2, kind: input, shape index: {}]   ;;  %s545_s3 = inlined_call_operand.vmem [shape: f32[64,128], index: 3, kind: output, shape index: {}]  }
   0x1   :  { %v22_v0 = vld [vmem:[%s542_s1] sm:$0xff]  ;;  %v23_v1 = vld [vmem:[%s542_s1 + $0x8] sm:$0xff]  ;;  %v24_v2 = vld [vmem:[%s542_s1 + $0x10] sm:$0xff] }
   0x2   :  { %v311_v3 = vpack.c.bf16 %v23_v1, %v22_v0  ;;  %v25_v4 = vld [vmem:[%s542_s1 + $0x18] sm:$0xff]  ;;  %v26_v6 = vld [vmem:[%s542_s1 + $0x20] sm:$0xff]  ;;  %v27_v7 = vld [vmem:[%s542_s1 + $0x28] sm:$0xff] }
   0x3   :  { %v315_v5 = vpack.c.bf16 %v25_v4, %v24_v2  ;;  %v319_v8 = vpack.c.bf16 %v27_v7, %v26_v6  ;;  %v14_v9 = vld [vmem:[%s543_s0] sm:$0xff]  ;;  %v28_v11 = vld [vmem:[%s542_s1 + $0x30] sm:$0xff]  ;;  %v29_v12 = vld [vmem:[%s542_s1 + $0x38] sm:$0xff] }
   0x4   :  { %312 = vmatprep.subr.bf16.mxu0 %v311_v3  ;;  %343 = vmatprep.subr.bf16.mxu1 %v311_v3  ;;  %v18_v10 = vld [vmem:[%s543_s0 + $0x20] sm:$0xff]  ;;  %v323_v13 = vpack.c.bf16 %v29_v12, %v28_v11  ;;  %v31_v15 = vld [vmem:[%s542_s1 + $0x48] sm:$0xff]  ;;  %v32_v17 = vld [vmem:[%s542_s1 + $0x50] sm:$0xff] }
   0x5   :  { %314 = vmatpush3.bf16.msra.mxu0 %v311_v3  ;;  %351 = vmatpush3.bf16.msra.mxu1 %v311_v3  ;;  %v30_v14 = vld [vmem:[%s542_s1 + $0x40] sm:$0xff]  ;;  %v33_v18 = vld [vmem:[%s542_s1 + $0x58] sm:$0xff]  ;;  %v35_v21 = vld [vmem:[%s542_s1 + $0x68] sm:$0xff] }
   0x6   :  { %316 = vmatprep.subr.bf16.mxu0 %v315_v5  ;;  %344 = vmatprep.subr.bf16.mxu1 %v315_v5  ;;  %v327_v16 = vpack.c.bf16 %v31_v15, %v30_v14  ;;  %v331_v19 = vpack.c.bf16 %v33_v18, %v32_v17  ;;  %v34_v20 = vld [vmem:[%s542_s1 + $0x60] sm:$0xff]  ;;  %v36_v23 = vld [vmem:[%s542_s1 + $0x70] sm:$0xff]  ;;  %v37_v24 = vld [vmem:[%s542_s1 + $0x78] sm:$0xff] }
   0x7   :  { %299 = vmatprep.mubr.f32.mxu0 %v14_v9  ;;  %305 = vmatprep.mubr.f32.mxu1 %v18_v10  ;;  %v335_v22 = vpack.c.bf16 %v35_v21, %v34_v20  ;;  %v339_v25 = vpack.c.bf16 %v37_v24, %v36_v23  ;;  %v15_v26 = vld [vmem:[%s543_s0 + $0x8] sm:$0xff]  ;;  %v16_v28 = vld [vmem:[%s543_s0 + $0x10] sm:$0xff]  ;;  %v17_v30 = vld [vmem:[%s543_s0 + $0x18] sm:$0xff] }
   0x8   :  { %v19_v27 = vld [vmem:[%s543_s0 + $0x28] sm:$0xff]  ;;  %v20_v29 = vld [vmem:[%s543_s0 + $0x30] sm:$0xff]  ;;  %v21_v31 = vld [vmem:[%s543_s0 + $0x38] sm:$0xff] }
   0x9   :  { %318 = vmatpush3.bf16.msra.mxu0 %v315_v5  ;;  %352 = vmatpush3.bf16.msra.mxu1 %v315_v5  ;;  %v242_v32 = vld [vmem:[%s544_s2] ss:$0 sm:$0xff] }
   0xa   :  { %320 = vmatprep.subr.bf16.mxu0 %v319_v8  ;;  %345 = vmatprep.subr.bf16.mxu1 %v319_v8 }
   0xd   :  { %322 = vmatpush3.bf16.msra.mxu0 %v319_v8  ;;  %353 = vmatpush3.bf16.msra.mxu1 %v319_v8 }
   0xe   :  { %324 = vmatprep.subr.bf16.mxu0 %v323_v13  ;;  %346 = vmatprep.subr.bf16.mxu1 %v323_v13 }
  0x11   :  { %326 = vmatpush3.bf16.msra.mxu0 %v323_v13  ;;  %354 = vmatpush3.bf16.msra.mxu1 %v323_v13 }
  0x12   :  { %328 = vmatprep.subr.bf16.mxu0 %v327_v16  ;;  %347 = vmatprep.subr.bf16.mxu1 %v327_v16 }
  0x15   :  { %330 = vmatpush3.bf16.msra.mxu0 %v327_v16  ;;  %355 = vmatpush3.bf16.msra.mxu1 %v327_v16 }
  0x16   :  { %332 = vmatprep.subr.bf16.mxu0 %v331_v19  ;;  %348 = vmatprep.subr.bf16.mxu1 %v331_v19 }
  0x19   :  { %334 = vmatpush3.bf16.msra.mxu0 %v331_v19  ;;  %356 = vmatpush3.bf16.msra.mxu1 %v331_v19 }
  0x1a   :  { %336 = vmatprep.subr.bf16.mxu0 %v335_v22  ;;  %349 = vmatprep.subr.bf16.mxu1 %v335_v22 }
  0x1d   :  { %338 = vmatpush3.bf16.msra.mxu0 %v335_v22  ;;  %357 = vmatpush3.bf16.msra.mxu1 %v335_v22 }
  0x1e   :  { %340 = vmatprep.subr.bf16.mxu0 %v339_v25  ;;  %350 = vmatprep.subr.bf16.mxu1 %v339_v25 }
  0x21   :  { %342 = vmatpush3.bf16.msra.mxu0 %v339_v25  ;;  %358 = vmatpush3.bf16.msra.mxu1 %v339_v25 }
  0x24   :  { %300 = vmatmul.mubr.f32.vlgmr.msra.gmra.mrb[0].mxu0 %v15_v26  ;;  %306 = vmatmul.mubr.f32.vlgmr.msra.gmra.mrb[0].mxu1 %v19_v27 }
  0x25   :  { %302 = vmatprep.mubr.f32.mxu0 %v16_v28  ;;  %308 = vmatprep.mubr.f32.mxu1 %v20_v29 }
  0x28   :  { %303 = vmatmul.mubr.f32.gmra.mrb[2].mxu0 %v17_v30  ;;  %309 = vmatmul.mubr.f32.gmra.mrb[2].mxu1 %v21_v31 }
  0xf7   :  { %v301_v33 = vpop.f32.mrb[0].mxu0  ;;  %v307_v34 = vpop.f32.mrb[0].mxu1 }
  0xf8   :  { %v117_v35 = vadd.f32 %v301_v33, %v242_v32  ;;  %v137_v36 = vadd.f32 %v307_v34, %v242_v32  ;;  %v111_v37 = vpop.f32.mrb[1].mxu0  ;;  %v131_v38 = vpop.f32.mrb[1].mxu1 }
  0xf9   :  { %v112_v41 = vadd.f32 %v242_v32, %v111_v37  ;;  %v132_v46 = vadd.f32 %v242_v32, %v131_v38 }
  0xfa   :  { %160 = vmax.xlane.f32.xlu1 %v137_v36  ;;  %152 = vmax.xlane.f32.xlu0 %v117_v35 }
  0xfb   :  { %v304_v39 = vpop.f32.mrb[2].mxu0  ;;  %v310_v40 = vpop.f32.mrb[2].mxu1 }
  0xfc   :  { %v127_v42 = vadd.f32 %v304_v39, %v242_v32  ;;  %v121_v43 = vpop.f32.mrb[3].mxu0  ;;  %v141_v44 = vpop.f32.mrb[3].mxu1  ;;  %v147_v47 = vadd.f32 %v310_v40, %v242_v32 }
  0xfd   :  { %v122_v45 = vadd.f32 %v242_v32, %v121_v43  ;;  %v142_v48 = vadd.f32 %v242_v32, %v141_v44 }
  0xfe   :  { %156 = vmax.xlane.f32.xlu1 %v127_v42  ;;  %150 = vmax.xlane.f32.xlu0 %v112_v41 }
 0x102   :  { %154 = vmax.xlane.f32.xlu1 %v122_v45  ;;  %158 = vmax.xlane.f32.xlu0 %v132_v46 }
 0x106   :  { %164 = vmax.xlane.f32.xlu1 %v147_v47  ;;  %162 = vmax.xlane.f32.xlu0 %v142_v48 }
 0x187   :  { %v161_v49 = vpop.xlane.xlu1 %160  ;;  %v153_v50 = vpop.xlane.xlu0 %152 }
 0x188   :  { %v486_v51 = vsub.f32 %v137_v36, %v161_v49  ;;  %v488_v52 = vsub.f32 %v117_v35, %v153_v50 }
 0x18a   :  { %v176_v53 = vmul.f32 1.442695, %v488_v52  ;;  %v184_v56 = vmul.f32 1.442695, %v486_v51 }
 0x18b   :  { %v157_v54 = vpop.xlane.xlu1 %156  ;;  %v151_v55 = vpop.xlane.xlu0 %150 }
 0x18c   :  { %v492_v57 = vsub.f32 %v127_v42, %v157_v54  ;;  %v494_v58 = vsub.f32 %v112_v41, %v151_v55  ;;  %359 = vpow2.f32 %v176_v53 }
 0x18d   :  { %361 = vpow2.f32 %v184_v56 }
 0x18e   :  { %v174_v59 = vmul.f32 1.442695, %v494_v58  ;;  %v180_v62 = vmul.f32 1.442695, %v492_v57 }
 0x18f   :  { %v155_v60 = vpop.xlane.xlu1 %154  ;;  %v159_v61 = vpop.xlane.xlu0 %158 }
 0x190   :  { %v498_v63 = vsub.f32 %v132_v46, %v159_v61  ;;  %363 = vpow2.f32 %v174_v59  ;;  %v500_v0 = vsub.f32 %v122_v45, %v155_v60 }
 0x191   :  { %365 = vpow2.f32 %v180_v62 }
 0x192   :  { %v182_v1 = vmul.f32 1.442695, %v498_v63  ;;  %v178_v5 = vmul.f32 1.442695, %v500_v0 }
 0x193   :  { %v165_v2 = vpop.xlane.xlu1 %164  ;;  %v163_v3 = vpop.xlane.xlu0 %162 }
 0x194   :  { %v503_v4 = vsub.f32 %v147_v47, %v165_v2  ;;  %367 = vpow2.f32 %v182_v1  ;;  %v506_v6 = vsub.f32 %v142_v48, %v163_v3 }
 0x196   :  { %v188_v7 = vmul.f32 1.442695, %v503_v4  ;;  %v360_v8 = vpop.eup %359  ;;  %v186_v9 = vmul.f32 1.442695, %v506_v6 }
 0x197   :  { %192 = vadd.xlane.f32.xlu1 %v360_v8  ;;  %v362_v10 = vpop.eup %361 }
 0x198   :  { %369 = vpow2.f32 %v188_v7 }
 0x199   :  { %371 = vpow2.f32 %v178_v5 }
 0x19a   :  { %v364_v11 = vpop.eup %363  ;;  %373 = vpow2.f32 %v186_v9 }
 0x19b   :  { %200 = vadd.xlane.f32.xlu1 %v362_v10  ;;  %190 = vadd.xlane.f32.xlu0 %v364_v11  ;;  %v366_v12 = vpop.eup %365 }
 0x19e   :  { %v368_v13 = vpop.eup %367 }
 0x19f   :  { %196 = vadd.xlane.f32.xlu1 %v366_v12  ;;  %198 = vadd.xlane.f32.xlu0 %v368_v13 }
 0x1a2   :  { %v370_v14 = vpop.eup %369 }
 0x1a3   :  { %v372_v15 = vpop.eup %371  ;;  %204 = vadd.xlane.f32.xlu1 %v370_v14 }
 0x1a4   :  { %194 = vadd.xlane.f32.xlu0 %v372_v15  ;;  %v374_v16 = vpop.eup %373 }
 0x1a8   :  { %202 = vadd.xlane.f32.xlu0 %v374_v16 }
 0x224   :  { %v193_v17 = vpop.xlane.xlu1 %192 }
 0x225   :  { %375 = vlog2.f32 %v193_v17 }
 0x228   :  { %v201_v18 = vpop.xlane.xlu1 %200  ;;  %v191_v19 = vpop.xlane.xlu0 %190 }
 0x229   :  { %377 = vlog2.f32 %v201_v18 }
 0x22a   :  { %379 = vlog2.f32 %v191_v19 }
 0x22c   :  { %v197_v20 = vpop.xlane.xlu1 %196  ;;  %v199_v21 = vpop.xlane.xlu0 %198 }
 0x22d   :  { %381 = vlog2.f32 %v197_v20 }
 0x22e   :  { %383 = vlog2.f32 %v199_v21 }
 0x22f   :  { %v376_v22 = vpop.eup %375 }
 0x230   :  { %v209_v23 = vmul.f32 0.6931472, %v376_v22  ;;  %v205_v24 = vpop.xlane.xlu1 %204 }
 0x231   :  { %v195_v25 = vpop.xlane.xlu0 %194  ;;  %385 = vlog2.f32 %v205_v24 }
 0x232   :  { %v223_v26 = vsub.f32 %v488_v52, %v209_v23  ;;  %387 = vlog2.f32 %v195_v25 }
 0x233   :  { %v378_v27 = vpop.eup %377 }
 0x234   :  { %v380_v28 = vpop.eup %379  ;;  %231 = vst [vmem:[%s545_s3 + $0x8] sm:$0xff] %v223_v26  ;;  %v217_v29 = vmul.f32 0.6931472, %v378_v27 }
 0x235   :  { %v203_v30 = vpop.xlane.xlu0 %202  ;;  %v207_v31 = vmul.f32 0.6931472, %v380_v28 }
 0x236   :  { %389 = vlog2.f32 %v203_v30  ;;  %v227_v32 = vsub.f32 %v486_v51, %v217_v29 }
 0x237   :  { %v382_v33 = vpop.eup %381  ;;  %v222_v34 = vsub.f32 %v494_v58, %v207_v31 }
 0x238   :  { %v384_v35 = vpop.eup %383  ;;  %235 = vst [vmem:[%s545_s3 + $0x28] sm:$0xff] %v227_v32  ;;  %v213_v36 = vmul.f32 0.6931472, %v382_v33 }
 0x239   :  { %230 = vst [vmem:[%s545_s3] sm:$0xff] %v222_v34  ;;  %v215_v37 = vmul.f32 0.6931472, %v384_v35 }
 0x23a   :  { %v225_v38 = vsub.f32 %v492_v57, %v213_v36 }
 0x23b   :  { %v386_v39 = vpop.eup %385  ;;  %v226_v40 = vsub.f32 %v498_v63, %v215_v37 }
 0x23c   :  { %v388_v41 = vpop.eup %387  ;;  %233 = vst [vmem:[%s545_s3 + $0x18] sm:$0xff] %v225_v38  ;;  %v221_v42 = vmul.f32 0.6931472, %v386_v39 }
 0x23d   :  { %234 = vst [vmem:[%s545_s3 + $0x20] sm:$0xff] %v226_v40  ;;  %v211_v43 = vmul.f32 0.6931472, %v388_v41 }
 0x23e   :  { %v229_v44 = vsub.f32 %v503_v4, %v221_v42 }
 0x23f   :  { %v224_v46 = vsub.f32 %v500_v0, %v211_v43 }
 0x240   :  { %v390_v45 = vpop.eup %389  ;;  %237 = vst [vmem:[%s545_s3 + $0x38] sm:$0xff] %v229_v44 }
 0x241   :  { %v219_v47 = vmul.f32 0.6931472, %v390_v45  ;;  %232 = vst [vmem:[%s545_s3 + $0x10] sm:$0xff] %v224_v46 }
 0x243   :  { %v228_v48 = vsub.f32 %v506_v6, %v219_v47 }
 0x245   :  { %236 = vst [vmem:[%s545_s3 + $0x30] sm:$0xff] %v228_v48 }

// kernel: rnn_forward_sequence.4
= control target key start
LH: loop header
LB: loop body
LE: loop exit
PB: predicated region body
PF: predicated region fallthrough
CT: control target
= control target key end

     0   :  { %v1265_v0 = vmov 0.0|0.0   ;;  %vm1266_vm0 = vmmov 0   ;;  %v1267_v4 = vmov 0.0   ;;  %s1547_s2 = inlined_call_operand.vmem [shape: f32[128,128], index: 2, kind: input, shape index: {}]   ;;  %s1548_s0 = inlined_call_operand.vmem [shape: f32[8,128], index: 0, kind: input, shape index: {}]   ;;  %s1549_s1 = inlined_call_operand.vmem [shape: f32[8,8,128], index: 1, kind: input, shape index: {}]   ;;  %s1550_s3 = inlined_call_operand.vmem [shape: f32[8,8,128], index: 3, kind: output, shape index: {}]  }
   0x1   :  { %1070 = vmatprep.subr.bf16.mxu0 %v1265_v0  ;;  %v20_v1 = vld [vmem:[%s1547_s2] sm:$0xff]  ;;  %v21_v2 = vld [vmem:[%s1547_s2 + $0x8] sm:$0xff]  ;;  %v22_v3 = vld [vmem:[%s1547_s2 + $0x10] sm:$0xff]  ;;  %822 = vmatprep.mubr.msk.f32.mxu0 %vm1266_vm0, %v1267_v4 }
   0x2   :  { %v1300_v5 = vpack.c.bf16 %v21_v2, %v20_v1  ;;  %v23_v6 = vld [vmem:[%s1547_s2 + $0x18] sm:$0xff]  ;;  %1094 = vmatprep.subr.bf16.mxu1 %v1265_v0  ;;  %857 = vmatprep.mubr.msk.f32.mxu1 %vm1266_vm0, %v1267_v4  ;;  %v24_v8 = vld [vmem:[%s1547_s2 + $0x20] sm:$0xff]  ;;  %v25_v9 = vld [vmem:[%s1547_s2 + $0x28] sm:$0xff] }
   0x3   :  { %v1309_v7 = vpack.c.bf16 %v23_v6, %v22_v3  ;;  %v1321_v10 = vpack.c.bf16 %v25_v9, %v24_v8  ;;  %v26_v11 = vld [vmem:[%s1547_s2 + $0x30] sm:$0xff]  ;;  %v27_v12 = vld [vmem:[%s1547_s2 + $0x38] sm:$0xff]  ;;  %v28_v14 = vld [vmem:[%s1547_s2 + $0x40] sm:$0xff] }
   0x4   :  { %1072 = vmatpush3.bf16.msra.mxu0 %v1300_v5  ;;  %1096 = vmatpush3.bf16.msra.mxu1 %v1300_v5  ;;  %v1333_v13 = vpack.c.bf16 %v27_v12, %v26_v11  ;;  %v29_v15 = vld [vmem:[%s1547_s2 + $0x48] sm:$0xff]  ;;  %v30_v17 = vld [vmem:[%s1547_s2 + $0x50] sm:$0xff]  ;;  %v31_v18 = vld [vmem:[%s1547_s2 + $0x58] sm:$0xff] }
   0x5   :  { %1073 = vmatprep.subr.bf16.mxu0 %v1265_v0  ;;  %1097 = vmatprep.subr.bf16.mxu1 %v1265_v0  ;;  %v1345_v16 = vpack.c.bf16 %v29_v15, %v28_v14  ;;  %v1357_v19 = vpack.c.bf16 %v31_v18, %v30_v17  ;;  %v32_v20 = vld [vmem:[%s1547_s2 + $0x60] sm:$0xff]  ;;  %v33_v21 = vld [vmem:[%s1547_s2 + $0x68] sm:$0xff]  ;;  %v34_v23 = vld [vmem:[%s1547_s2 + $0x70] sm:$0xff] }
   0x6   :  { %v1369_v22 = vpack.c.bf16 %v33_v21, %v32_v20  ;;  %v35_v24 = vld [vmem:[%s1547_s2 + $0x78] sm:$0xff]  ;;  %v18_v26 = vld [vmem:[%s1548_s0] sm:$0xff]  ;;  %v640_v31 = vld [vmem:[%s1549_s1 + $0x8] sm:$0xff] }
   0x7   :  { %v1381_v25 = vpack.c.bf16 %v35_v24, %v34_v23  ;;  %v37_v27 = vld [vmem:[%s1549_s1] sm:$0xff]  ;;  %v642_v35 = vld [vmem:[%s1549_s1 + $0x10] sm:$0xff]  ;;  %v644_v39 = vld [vmem:[%s1549_s1 + $0x18] sm:$0xff] }
   0x8   :  { %1075 = vmatpush3.bf16.msra.mxu0 %v1309_v7  ;;  %1099 = vmatpush3.bf16.msra.mxu1 %v1309_v7  ;;  %v646_v43 = vld [vmem:[%s1549_s1 + $0x20] sm:$0xff]  ;;  %v648_v47 = vld [vmem:[%s1549_s1 + $0x28] sm:$0xff]  ;;  %v650_v51 = vld [vmem:[%s1549_s1 + $0x30] sm:$0xff] }
   0x9   :  { %1076 = vmatprep.subr.bf16.mxu0 %v1265_v0  ;;  %1100 = vmatprep.subr.bf16.mxu1 %v1265_v0  ;;  %v652_v55 = vld [vmem:[%s1549_s1 + $0x38] sm:$0xff] }
   0xc   :  { %1078 = vmatpush3.bf16.msra.mxu0 %v1321_v10  ;;  %1102 = vmatpush3.bf16.msra.mxu1 %v1321_v10 }
   0xd   :  { %1079 = vmatprep.subr.bf16.mxu0 %v1265_v0  ;;  %1103 = vmatprep.subr.bf16.mxu1 %v1265_v0 }
  0x10   :  { %1081 = vmatpush3.bf16.msra.mxu0 %v1333_v13  ;;  %1105 = vmatpush3.bf16.msra.mxu1 %v1333_v13 }
  0x11   :  { %1082 = vmatprep.subr.bf16.mxu0 %v1265_v0  ;;  %1106 = vmatprep.subr.bf16.mxu1 %v1265_v0 }
  0x14   :  { %1084 = vmatpush3.bf16.msra.mxu0 %v1345_v16  ;;  %1108 = vmatpush3.bf16.msra.mxu1 %v1345_v16 }
  0x15   :  { %1085 = vmatprep.subr.bf16.mxu0 %v1265_v0  ;;  %1109 = vmatprep.subr.bf16.mxu1 %v1265_v0 }
  0x18   :  { %1087 = vmatpush3.bf16.msra.mxu0 %v1357_v19  ;;  %1111 = vmatpush3.bf16.msra.mxu1 %v1357_v19 }
  0x19   :  { %1088 = vmatprep.subr.bf16.mxu0 %v1265_v0  ;;  %1112 = vmatprep.subr.bf16.mxu1 %v1265_v0 }
  0x1c   :  { %1090 = vmatpush3.bf16.msra.mxu0 %v1369_v22  ;;  %1114 = vmatpush3.bf16.msra.mxu1 %v1369_v22 }
  0x1d   :  { %1091 = vmatprep.subr.bf16.mxu0 %v1265_v0  ;;  %1115 = vmatprep.subr.bf16.mxu1 %v1265_v0 }
  0x20   :  { %1093 = vmatpush3.bf16.msra.mxu0 %v1381_v25  ;;  %1117 = vmatpush3.bf16.msra.mxu1 %v1381_v25 }
  0x21   :  { %1118 = vmatprep.subr.bf16.mxu0 %v1265_v0  ;;  %1142 = vmatprep.subr.bf16.mxu1 %v1265_v0 }
  0x23   :  { %823 = vmatmul.mubr.f32.vlgmr.msra.gmra.mrb[0].mxu0 %v18_v26 }
  0x24   :  { %1120 = vmatpush3.bf16.msra.mxu0 %v1300_v5  ;;  %892 = vmatprep.mubr.msk.f32.mxu0 %vm1266_vm0, %v1267_v4 }
  0x25   :  { %1121 = vmatprep.subr.bf16.mxu0 %v1265_v0 }
  0x28   :  { %1123 = vmatpush3.bf16.msra.mxu0 %v1309_v7 }
  0x29   :  { %1124 = vmatprep.subr.bf16.mxu0 %v1265_v0 }
  0x2c   :  { %1126 = vmatpush3.bf16.msra.mxu0 %v1321_v10 }
  0x2d   :  { %1127 = vmatprep.subr.bf16.mxu0 %v1265_v0 }
  0x30   :  { %1129 = vmatpush3.bf16.msra.mxu0 %v1333_v13 }
  0x31   :  { %1130 = vmatprep.subr.bf16.mxu0 %v1265_v0 }
  0x34   :  { %1132 = vmatpush3.bf16.msra.mxu0 %v1345_v16 }
  0x35   :  { %1133 = vmatprep.subr.bf16.mxu0 %v1265_v0 }
  0x38   :  { %1135 = vmatpush3.bf16.msra.mxu0 %v1357_v19 }
  0x39   :  { %1136 = vmatprep.subr.bf16.mxu0 %v1265_v0 }
  0x3c   :  { %1138 = vmatpush3.bf16.msra.mxu0 %v1369_v22 }
  0x3d   :  { %1139 = vmatprep.subr.bf16.mxu0 %v1265_v0 }
  0x40   :  { %1141 = vmatpush3.bf16.msra.mxu0 %v1381_v25 }
  0x41   :  { %1166 = vmatprep.subr.bf16.mxu0 %v1265_v0 }
  0xf6   :  { %v104_v28 = vpop.f32.mrb[0].mxu0 }
  0xf7   :  { %v108_v29 = vadd.f32 %v104_v28, %v37_v27  ;;  %v824_v30 = vpop.f32.mrb[1].mxu0 }
  0xf9   :  { %109 = vst [vmem:[%s1550_s3] sm:$0xff] %v108_v29  ;;  %858 = vmatmul.mubr.f32.vlgmr.msra.gmra.mrb[0].mxu1 %v108_v29 }
  0xfa   :  { %1144 = vmatpush3.bf16.msra.mxu1 %v1300_v5  ;;  %927 = vmatprep.mubr.msk.f32.mxu1 %vm1266_vm0, %v1267_v4 }
  0xfb   :  { %1145 = vmatprep.subr.bf16.mxu1 %v1265_v0 }
  0xfe   :  { %1147 = vmatpush3.bf16.msra.mxu1 %v1309_v7 }
  0xff   :  { %1148 = vmatprep.subr.bf16.mxu1 %v1265_v0 }
 0x102   :  { %1150 = vmatpush3.bf16.msra.mxu1 %v1321_v10 }
 0x103   :  { %1151 = vmatprep.subr.bf16.mxu1 %v1265_v0 }
 0x106   :  { %1153 = vmatpush3.bf16.msra.mxu1 %v1333_v13 }
 0x107   :  { %1154 = vmatprep.subr.bf16.mxu1 %v1265_v0 }
 0x10a   :  { %1156 = vmatpush3.bf16.msra.mxu1 %v1345_v16 }
 0x10b   :  { %1157 = vmatprep.subr.bf16.mxu1 %v1265_v0 }
 0x10e   :  { %1159 = vmatpush3.bf16.msra.mxu1 %v1357_v19 }
 0x10f   :  { %1160 = vmatprep.subr.bf16.mxu1 %v1265_v0 }
 0x112   :  { %1162 = vmatpush3.bf16.msra.mxu1 %v1369_v22 }
 0x113   :  { %1163 = vmatprep.subr.bf16.mxu1 %v1265_v0 }
 0x116   :  { %1165 = vmatpush3.bf16.msra.mxu1 %v1381_v25 }
 0x117   :  { %1190 = vmatprep.subr.bf16.mxu1 %v1265_v0 }
 0x1cc   :  { %v178_v32 = vpop.f32.mrb[0].mxu1 }
 0x1cd   :  { %v182_v33 = vadd.f32 %v640_v31, %v178_v32  ;;  %v859_v34 = vpop.f32.mrb[1].mxu1 }
 0x1cf   :  { %641 = vst [vmem:[%s1550_s3 + $0x8] sm:$0xff] %v182_v33  ;;  %893 = vmatmul.mubr.f32.vlgmr.msra.gmra.mrb[2].mxu0 %v182_v33 }
 0x1d0   :  { %1168 = vmatpush3.bf16.msra.mxu0 %v1300_v5  ;;  %962 = vmatprep.mubr.msk.f32.mxu0 %vm1266_vm0, %v1267_v4 }
 0x1d1   :  { %1169 = vmatprep.subr.bf16.mxu0 %v1265_v0 }
 0x1d4   :  { %1171 = vmatpush3.bf16.msra.mxu0 %v1309_v7 }
 0x1d5   :  { %1172 = vmatprep.subr.bf16.mxu0 %v1265_v0 }
 0x1d8   :  { %1174 = vmatpush3.bf16.msra.mxu0 %v1321_v10 }
 0x1d9   :  { %1175 = vmatprep.subr.bf16.mxu0 %v1265_v0 }
 0x1dc   :  { %1177 = vmatpush3.bf16.msra.mxu0 %v1333_v13 }
 0x1dd   :  { %1178 = vmatprep.subr.bf16.mxu0 %v1265_v0 }
 0x1e0   :  { %1180 = vmatpush3.bf16.msra.mxu0 %v1345_v16 }
 0x1e1   :  { %1181 = vmatprep.subr.bf16.mxu0 %v1265_v0 }
 0x1e4   :  { %1183 = vmatpush3.bf16.msra.mxu0 %v1357_v19 }
 0x1e5   :  { %1184 = vmatprep.subr.bf16.mxu0 %v1265_v0 }
 0x1e8   :  { %1186 = vmatpush3.bf16.msra.mxu0 %v1369_v22 }
 0x1e9   :  { %1187 = vmatprep.subr.bf16.mxu0 %v1265_v0 }
 0x1ec   :  { %1189 = vmatpush3.bf16.msra.mxu0 %v1381_v25 }
 0x1ed   :  { %1214 = vmatprep.subr.bf16.mxu0 %v1265_v0 }
 0x2a2   :  { %v253_v36 = vpop.f32.mrb[2].mxu0 }
 0x2a3   :  { %v257_v37 = vadd.f32 %v642_v35, %v253_v36  ;;  %v894_v38 = vpop.f32.mrb[3].mxu0 }
 0x2a5   :  { %643 = vst [vmem:[%s1550_s3 + $0x10] sm:$0xff] %v257_v37  ;;  %928 = vmatmul.mubr.f32.vlgmr.msra.gmra.mrb[2].mxu1 %v257_v37 }
 0x2a6   :  { %1192 = vmatpush3.bf16.msra.mxu1 %v1300_v5  ;;  %997 = vmatprep.mubr.msk.f32.mxu1 %vm1266_vm0, %v1267_v4 }
 0x2a7   :  { %1193 = vmatprep.subr.bf16.mxu1 %v1265_v0 }
 0x2aa   :  { %1195 = vmatpush3.bf16.msra.mxu1 %v1309_v7 }
 0x2ab   :  { %1196 = vmatprep.subr.bf16.mxu1 %v1265_v0 }
 0x2ae   :  { %1198 = vmatpush3.bf16.msra.mxu1 %v1321_v10 }
 0x2af   :  { %1199 = vmatprep.subr.bf16.mxu1 %v1265_v0 }
 0x2b2   :  { %1201 = vmatpush3.bf16.msra.mxu1 %v1333_v13 }
 0x2b3   :  { %1202 = vmatprep.subr.bf16.mxu1 %v1265_v0 }
 0x2b6   :  { %1204 = vmatpush3.bf16.msra.mxu1 %v1345_v16 }
 0x2b7   :  { %1205 = vmatprep.subr.bf16.mxu1 %v1265_v0 }
 0x2ba   :  { %1207 = vmatpush3.bf16.msra.mxu1 %v1357_v19 }
 0x2bb   :  { %1208 = vmatprep.subr.bf16.mxu1 %v1265_v0 }
 0x2be   :  { %1210 = vmatpush3.bf16.msra.mxu1 %v1369_v22 }
 0x2bf   :  { %1211 = vmatprep.subr.bf16.mxu1 %v1265_v0 }
 0x2c2   :  { %1213 = vmatpush3.bf16.msra.mxu1 %v1381_v25 }
 0x2c3   :  { %1238 = vmatprep.subr.bf16.mxu1 %v1265_v0 }
 0x378   :  { %v328_v40 = vpop.f32.mrb[2].mxu1 }
 0x379   :  { %v332_v41 = vadd.f32 %v644_v39, %v328_v40  ;;  %v929_v42 = vpop.f32.mrb[3].mxu1 }
 0x37b   :  { %645 = vst [vmem:[%s1550_s3 + $0x18] sm:$0xff] %v332_v41  ;;  %963 = vmatmul.mubr.f32.vlgmr.msra.gmra.mrb[4].mxu0 %v332_v41 }
 0x37c   :  { %1216 = vmatpush3.bf16.msra.mxu0 %v1300_v5  ;;  %1032 = vmatprep.mubr.msk.f32.mxu0 %vm1266_vm0, %v1267_v4 }
 0x37d   :  { %1217 = vmatprep.subr.bf16.mxu0 %v1265_v0 }
 0x380   :  { %1219 = vmatpush3.bf16.msra.mxu0 %v1309_v7 }
 0x381   :  { %1220 = vmatprep.subr.bf16.mxu0 %v1265_v0 }
 0x384   :  { %1222 = vmatpush3.bf16.msra.mxu0 %v1321_v10 }
 0x385   :  { %1223 = vmatprep.subr.bf16.mxu0 %v1265_v0 }
 0x388   :  { %1225 = vmatpush3.bf16.msra.mxu0 %v1333_v13 }
 0x389   :  { %1226 = vmatprep.subr.bf16.mxu0 %v1265_v0 }
 0x38c   :  { %1228 = vmatpush3.bf16.msra.mxu0 %v1345_v16 }
 0x38d   :  { %1229 = vmatprep.subr.bf16.mxu0 %v1265_v0 }
 0x390   :  { %1231 = vmatpush3.bf16.msra.mxu0 %v1357_v19 }
 0x391   :  { %1232 = vmatprep.subr.bf16.mxu0 %v1265_v0 }
 0x394   :  { %1234 = vmatpush3.bf16.msra.mxu0 %v1369_v22 }
 0x395   :  { %1235 = vmatprep.subr.bf16.mxu0 %v1265_v0 }
 0x398   :  { %1237 = vmatpush3.bf16.msra.mxu0 %v1381_v25 }
 0x44e   :  { %v403_v44 = vpop.f32.mrb[4].mxu0 }
 0x44f   :  { %v407_v45 = vadd.f32 %v646_v43, %v403_v44  ;;  %v964_v46 = vpop.f32.mrb[5].mxu0 }
 0x451   :  { %647 = vst [vmem:[%s1550_s3 + $0x20] sm:$0xff] %v407_v45  ;;  %998 = vmatmul.mubr.f32.vlgmr.msra.gmra.mrb[4].mxu1 %v407_v45 }
 0x452   :  { %1240 = vmatpush3.bf16.msra.mxu1 %v1300_v5  ;;  %1067 = vmatprep.mubr.msk.f32.mxu1 %vm1266_vm0, %v1267_v4 }
 0x453   :  { %1241 = vmatprep.subr.bf16.mxu1 %v1265_v0 }
 0x456   :  { %1243 = vmatpush3.bf16.msra.mxu1 %v1309_v7 }
 0x457   :  { %1244 = vmatprep.subr.bf16.mxu1 %v1265_v0 }
 0x45a   :  { %1246 = vmatpush3.bf16.msra.mxu1 %v1321_v10 }
 0x45b   :  { %1247 = vmatprep.subr.bf16.mxu1 %v1265_v0 }
 0x45e   :  { %1249 = vmatpush3.bf16.msra.mxu1 %v1333_v13 }
 0x45f   :  { %1250 = vmatprep.subr.bf16.mxu1 %v1265_v0 }
 0x462   :  { %1252 = vmatpush3.bf16.msra.mxu1 %v1345_v16 }
 0x463   :  { %1253 = vmatprep.subr.bf16.mxu1 %v1265_v0 }
 0x466   :  { %1255 = vmatpush3.bf16.msra.mxu1 %v1357_v19 }
 0x467   :  { %1256 = vmatprep.subr.bf16.mxu1 %v1265_v0 }
 0x46a   :  { %1258 = vmatpush3.bf16.msra.mxu1 %v1369_v22 }
 0x46b   :  { %1259 = vmatprep.subr.bf16.mxu1 %v1265_v0 }
 0x46e   :  { %1261 = vmatpush3.bf16.msra.mxu1 %v1381_v25 }
 0x524   :  { %v478_v48 = vpop.f32.mrb[4].mxu1 }
 0x525   :  { %v482_v49 = vadd.f32 %v648_v47, %v478_v48  ;;  %v999_v50 = vpop.f32.mrb[5].mxu1 }
 0x527   :  { %649 = vst [vmem:[%s1550_s3 + $0x28] sm:$0xff] %v482_v49  ;;  %1033 = vmatmul.mubr.f32.vlgmr.msra.gmra.mrb[6].mxu0 %v482_v49 }
 0x5fa   :  { %v553_v52 = vpop.f32.mrb[6].mxu0 }
 0x5fb   :  { %v557_v53 = vadd.f32 %v650_v51, %v553_v52  ;;  %v1034_v54 = vpop.f32.mrb[7].mxu0 }
 0x5fd   :  { %651 = vst [vmem:[%s1550_s3 + $0x30] sm:$0xff] %v557_v53  ;;  %1068 = vmatmul.mubr.f32.vlgmr.msra.gmra.mrb[6].mxu1 %v557_v53 }
 0x6d0   :  { %v628_v56 = vpop.f32.mrb[6].mxu1 }
 0x6d1   :  { %v632_v57 = vadd.f32 %v652_v55, %v628_v56  ;;  %v1069_v58 = vpop.f32.mrb[7].mxu1 }
 0x6d3   :  { %653 = vst [vmem:[%s1550_s3 + $0x38] sm:$0xff] %v632_v57 }

</bundles_post_ra>
